<compile_context>
chip_gen: v7x
topology: tpu7x:2x2x1
jax: 0.10.0
libtpu: 0.0.40
codegen_flags: <defaults>
</compile_context>

<pallas_src>
import functools

import jax
import jax.numpy as jnp
from jax import lax
from jax.experimental import pallas as pl
from jax.experimental.pallas import tpu as pltpu

INPUT_SIZE = 64
HIDDEN = 104
PAD = 128          # lane-padded feature width used everywhere inside the kernel
SUBLANE = 8
NUM_LAYERS = 5


# ---------------------------------------------------------------------------
# Kernel helpers
# ---------------------------------------------------------------------------
def _sigmoid(x):
    # tanh form keeps the transcendental entirely on the EUP slot.
    return 0.5 * jnp.tanh(0.5 * x) + 0.5


def _load_biases(b_refs, batch):
    """Load + broadcast biases ONCE (hoisted out of any step loop)."""
    return tuple(jnp.broadcast_to(b[...], (batch, PAD)) for b in b_refs)


def _mlp(h, w_refs, biases):
    """Padded 5-layer MLP.

    h: (B, PAD) f32 value; w_refs: (PAD, PAD) bf16 refs (re-read per layer —
    VMEM re-reads are free on the 3 vld slots); biases: (B, PAD) f32 values.
    """
    for i in range(NUM_LAYERS):
        z = jnp.dot(h.astype(jnp.bfloat16), w_refs[i][...],
                    preferred_element_type=jnp.float32) + biases[i]
        h = _sigmoid(z) if i < NUM_LAYERS - 1 else z
    return h


# ---------------------------------------------------------------------------
# Kernels
# ---------------------------------------------------------------------------
def _odefunc_kernel(y_ref,
                    w1, b1, w2, b2, w3, b3, w4, b4, w5, b5,
                    o_ref):
    """Single RHS evaluation: o = net(y). Whole batch block resident in VMEM."""
    w_refs = (w1, w2, w3, w4, w5)
    biases = _load_biases((b1, b2, b3, b4, b5), y_ref.shape[0])
    o_ref[...] = _mlp(y_ref[...], w_refs, biases).astype(o_ref.dtype)


def _odefunc_euler_kernel(num_steps, unroll,
                          y0_ref, dt_ref,
                          w1, b1, w2, b2, w3, b3, w4, b4, w5, b5,
                          o_ref):
    """num_steps forward-Euler steps fully inside one kernel invocation."""
    w_refs = (w1, w2, w3, w4, w5)
    biases = _load_biases((b1, b2, b3, b4, b5), y0_ref.shape[0])
    dt = dt_ref[0, 0]                      # runtime scalar from SMEM

    def step(_, y):
        return y + dt * _mlp(y, w_refs, biases)

    o_ref[...] = lax.fori_loop(0, num_steps, step, y0_ref[...], unroll=unroll)


def _odefunc_rk4_kernel(num_steps,
                        y0_ref, dt_ref,
                        w1, b1, w2, b2, w3, b3, w4, b4, w5, b5,
                        o_ref):
    """num_steps classic RK4 steps (4 RHS evals each) fused into one call;
    weights stay VMEM-resident across all 4*num_steps MLP evaluations."""
    w_refs = (w1, w2, w3, w4, w5)
    biases = _load_biases((b1, b2, b3, b4, b5), y0_ref.shape[0])
    dt = dt_ref[0, 0]
    half_dt = 0.5 * dt
    sixth_dt = dt * (1.0 / 6.0)

    def rhs(y):
        return _mlp(y, w_refs, biases)

    def step(_, y):
        k1 = rhs(y)
        k2 = rhs(y + half_dt * k1)
        k3 = rhs(y + half_dt * k2)
        k4 = rhs(y + dt * k3)
        return y + sixth_dt * (k1 + 2.0 * (k2 + k3) + k4)

    o_ref[...] = lax.fori_loop(0, num_steps, step, y0_ref[...])


# ---------------------------------------------------------------------------
# Wrappers
# ---------------------------------------------------------------------------
def _full_spec(shape):
    zeros = (0,) * len(shape)
    return pl.BlockSpec(shape, lambda *args: zeros)


_SMEM_SPEC = pl.BlockSpec(memory_space=pltpu.MemorySpace.SMEM)


def _pad_y(y):
    """Pad (batch, 64) input to (batch_pad, 128): sublane- and lane-dense."""
    batch = y.shape[0]
    bpad = (-batch) % SUBLANE
    y_pad = jnp.pad(y.astype(jnp.float32),
                    ((0, bpad), (0, PAD - y.shape[1])))
    return y_pad, batch


def odefunc_forward(t, y, kernel_params):
    """Pallas equivalent of ODEFunc.forward(t, y) -> net(y). `t` unused, as in
    PyTorch. Fallback path — prefer the fused integrators below."""
    del t  # unused, matching the reference module
    assert y.shape[1] == INPUT_SIZE
    y_pad, batch = _pad_y(y)
    bp = y_pad.shape[0]

    in_specs = [_full_spec(y_pad.shape)] + [_full_spec(p.shape) for p in kernel_params]
    out = pl.pallas_call(
        _odefunc_kernel,
        out_shape=jax.ShapeDtypeStruct((bp, PAD), jnp.float32),
        grid=(),
        in_specs=in_specs,
        out_specs=_full_spec((bp, PAD)),
    )(y_pad, *kernel_params)
    return out[:batch, :INPUT_SIZE].astype(y.dtype)


def _integrate(kernel_fn, y0, dt, kernel_params):
    assert y0.shape[1] == INPUT_SIZE
    y_pad, batch = _pad_y(y0)
    bp = y_pad.shape[0]
    dt_arr = jnp.asarray(dt, jnp.float32).reshape(1, 1)

    in_specs = ([_full_spec(y_pad.shape), _SMEM_SPEC]
                + [_full_spec(p.shape) for p in kernel_params])
    out = pl.pallas_call(
        kernel_fn,
        out_shape=jax.ShapeDtypeStruct((bp, PAD), jnp.float32),
        grid=(),
        in_specs=in_specs,
        out_specs=_full_spec((bp, PAD)),
        input_output_aliases={0: 0},   # donate the y0 block into the output
    )(y_pad, dt_arr, *kernel_params)
    return out[:batch, :INPUT_SIZE].astype(y0.dtype)


def odefunc_integrate_euler(y0, dt, num_steps, kernel_params, *, unroll=2):
    """Fused forward-Euler: all steps inside ONE pallas_call, in-kernel loop."""
    kern = functools.partial(_odefunc_euler_kernel, int(num_steps), unroll)
    return _integrate(kern, y0, dt, kernel_params)


def odefunc_integrate_rk4(y0, dt, num_steps, kernel_params):
    """Fused classic RK4: all stages/steps inside ONE pallas_call."""
    kern = functools.partial(_odefunc_rk4_kernel, int(num_steps))
    return _integrate(kern, y0, dt, kernel_params)


# TODO(synk): an adaptive-step controller (runtime-varying trip count / dt per
# step) would need the step count as an SMEM scalar + lax.while_loop; fixed-step
# Euler/RK4 cover the fused-solver pattern here.


# ---------------------------------------------------------------------------
# Parameters (PyTorch-equivalent init + kernel packing)
# ---------------------------------------------------------------------------
def init_torch_params(key, input_size=INPUT_SIZE, hidden=HIDDEN):
    """Mirrors the PyTorch module: W ~ N(0, 0.01) with shape (out, in);
    biases keep nn.Linear's default U(-1/sqrt(fan_in), +1/sqrt(fan_in))."""
    dims = [(hidden, input_size), (hidden, hidden), (hidden, hidden),
            (hidden, hidden), (input_size, hidden)]
    params = []
    for (fan_out, fan_in) in dims:
        key, kw, kb = jax.random.split(key, 3)
        w = 0.01 * jax.random.normal(kw, (fan_out, fan_in), dtype=jnp.float32)
        bound = 1.0 / float(fan_in) ** 0.5
        b = jax.random.uniform(kb, (fan_out,), dtype=jnp.float32,
                               minval=-bound, maxval=bound)
        params.append((w, b))
    return params


def pack_params(torch_params, weight_dtype=jnp.bfloat16):
    """Transpose to (in, out), zero-pad both dims to PAD=128, cast weights to
    bf16. The zero padding is exact: padded hidden lanes give sigmoid(0)=0.5 but
    hit zero rows of the next weight; padded output columns of the last layer
    are zero and sliced off in the wrapper."""
    packed = []
    for (w, b) in torch_params:
        wt = w.T  # (in, out)
        wt = jnp.pad(wt, ((0, PAD - wt.shape[0]), (0, PAD - wt.shape[1])))
        bp = jnp.pad(b, (0, PAD - b.shape[0])).reshape(1, PAD)
        packed += [wt.astype(weight_dtype), bp.astype(jnp.float32)]
    return packed


# ---------------------------------------------------------------------------
# Plain-JAX references
# ---------------------------------------------------------------------------
def odefunc_reference(y, torch_params):
    """Exact f32 reference of the PyTorch module."""
    h = y.astype(jnp.float32)
    for i, (w, b) in enumerate(torch_params):
        h = h @ w.T + b
        if i < NUM_LAYERS - 1:
            h = jax.nn.sigmoid(h)
    return h


def odefunc_reference_bf16(y, torch_params):
    """Same math as the kernel (bf16 weights/activations, f32 accumulate)."""
    h = y.astype(jnp.float32)
    for i, (w, b) in enumerate(torch_params):
        wq = w.astype(jnp.bfloat16).astype(jnp.float32)
        hq = h.astype(jnp.bfloat16).astype(jnp.float32)
        h = hq @ wq.T + b
        if i < NUM_LAYERS - 1:
            h = jax.nn.sigmoid(h)
    return h


# TODO(synk): the PyTorch module's `self.nfe` Python-side counter has no tensor
# equivalent and is intentionally not modeled in the kernel.

if __name__ == "__main__":
    key = jax.random.PRNGKey(0)
    key, ky = jax.random.split(key)

    batch = 8
    y = jax.random.normal(ky, (batch, INPUT_SIZE), dtype=jnp.float32)
    t = jnp.float32(0.0)  # unused by forward, kept for API parity

    torch_params = init_torch_params(key)
    kernel_params = pack_params(torch_params)

    # --- single RHS evaluation (ODEFunc.forward semantics) -----------------
    out = jax.block_until_ready(odefunc_forward(t, y, kernel_params))
    assert out.shape == (batch, INPUT_SIZE)

    ref_bf16 = odefunc_reference_bf16(y, torch_params)
    ref_f32 = odefunc_reference(y, torch_params)
    assert jnp.allclose(out, ref_bf16, atol=1e-4, rtol=1e-4), "mismatch vs bf16 reference"
    assert jnp.allclose(out, ref_f32, atol=5e-3, rtol=5e-3), "mismatch vs f32 reference"

    # --- fused multi-step Euler (in-kernel loop, weights VMEM-resident) ----
    dt, num_steps = 1e-2, 16
    y_eu = jax.block_until_ready(
        odefunc_integrate_euler(y, dt, num_steps, kernel_params))
    assert y_eu.shape == (batch, INPUT_SIZE)

    y_ref = y.astype(jnp.float32)
    for _ in range(num_steps):
        y_ref = y_ref + dt * odefunc_reference_bf16(y_ref, torch_params)
    assert jnp.allclose(y_eu, y_ref, atol=1e-3, rtol=1e-3), "mismatch vs Euler reference"

    # --- fused RK4 (real solver: 4 RHS stages per step, one pallas_call) ---
    y_rk = jax.block_until_ready(
        odefunc_integrate_rk4(y, dt, num_steps, kernel_params))
    assert y_rk.shape == (batch, INPUT_SIZE)

    y_ref4 = y.astype(jnp.float32)
    for _ in range(num_steps):
        k1 = odefunc_reference_bf16(y_ref4, torch_params)
        k2 = odefunc_reference_bf16(y_ref4 + 0.5 * dt * k1, torch_params)
        k3 = odefunc_reference_bf16(y_ref4 + 0.5 * dt * k2, torch_params)
        k4 = odefunc_reference_bf16(y_ref4 + dt * k3, torch_params)
        y_ref4 = y_ref4 + (dt / 6.0) * (k1 + 2.0 * k2 + 2.0 * k3 + k4)
    assert jnp.allclose(y_rk, y_ref4, atol=1e-3, rtol=1e-3), "mismatch vs RK4 reference"

    # --- dt is a runtime SMEM scalar: a different dt reuses the same binary -
    y_eu2 = jax.block_until_ready(
        odefunc_integrate_euler(y, 2e-2, num_steps, kernel_params))
    assert y_eu2.shape == (batch, INPUT_SIZE)

    print("KERNEL_OK")
</pallas_src>

<mosaic_0001>
module attributes {stable_mosaic.version = 11 : i64} {
  func.func @_odefunc_kernel(%arg0: memref<8x128xf32, #tpu.memory_space<vmem>>, %arg1: memref<128x128xbf16, #tpu.memory_space<vmem>>, %arg2: memref<1x128xf32, #tpu.memory_space<vmem>>, %arg3: memref<128x128xbf16, #tpu.memory_space<vmem>>, %arg4: memref<1x128xf32, #tpu.memory_space<vmem>>, %arg5: memref<128x128xbf16, #tpu.memory_space<vmem>>, %arg6: memref<1x128xf32, #tpu.memory_space<vmem>>, %arg7: memref<128x128xbf16, #tpu.memory_space<vmem>>, %arg8: memref<1x128xf32, #tpu.memory_space<vmem>>, %arg9: memref<128x128xbf16, #tpu.memory_space<vmem>>, %arg10: memref<1x128xf32, #tpu.memory_space<vmem>>, %arg11: memref<8x128xf32, #tpu.memory_space<vmem>>) attributes {dimension_semantics = [], scalar_prefetch = 0 : i64, scratch_operands = 0 : i64, tpu.core_type = #tpu.core_type<tc>} {
    %c0 = arith.constant 0 : index
    %c0_0 = arith.constant 0 : index
    %0 = vector.load %arg2[%c0, %c0_0] : memref<1x128xf32, #tpu.memory_space<vmem>>, vector<1x128xf32>
    %1 = vector.shape_cast %0 : vector<1x128xf32> to vector<1x128xf32>
    %2 = vector.broadcast %1 : vector<1x128xf32> to vector<8x128xf32>
    %c0_1 = arith.constant 0 : index
    %c0_2 = arith.constant 0 : index
    %3 = vector.load %arg4[%c0_1, %c0_2] : memref<1x128xf32, #tpu.memory_space<vmem>>, vector<1x128xf32>
    %4 = vector.shape_cast %3 : vector<1x128xf32> to vector<1x128xf32>
    %5 = vector.broadcast %4 : vector<1x128xf32> to vector<8x128xf32>
    %c0_3 = arith.constant 0 : index
    %c0_4 = arith.constant 0 : index
    %6 = vector.load %arg6[%c0_3, %c0_4] : memref<1x128xf32, #tpu.memory_space<vmem>>, vector<1x128xf32>
    %7 = vector.shape_cast %6 : vector<1x128xf32> to vector<1x128xf32>
    %8 = vector.broadcast %7 : vector<1x128xf32> to vector<8x128xf32>
    %c0_5 = arith.constant 0 : index
    %c0_6 = arith.constant 0 : index
    %9 = vector.load %arg8[%c0_5, %c0_6] : memref<1x128xf32, #tpu.memory_space<vmem>>, vector<1x128xf32>
    %10 = vector.shape_cast %9 : vector<1x128xf32> to vector<1x128xf32>
    %11 = vector.broadcast %10 : vector<1x128xf32> to vector<8x128xf32>
    %c0_7 = arith.constant 0 : index
    %c0_8 = arith.constant 0 : index
    %12 = vector.load %arg10[%c0_7, %c0_8] : memref<1x128xf32, #tpu.memory_space<vmem>>, vector<1x128xf32>
    %13 = vector.shape_cast %12 : vector<1x128xf32> to vector<1x128xf32>
    %14 = vector.broadcast %13 : vector<1x128xf32> to vector<8x128xf32>
    %c0_9 = arith.constant 0 : index
    %c0_10 = arith.constant 0 : index
    %15 = vector.load %arg0[%c0_9, %c0_10] : memref<8x128xf32, #tpu.memory_space<vmem>>, vector<8x128xf32>
    %16 = arith.truncf %15 : vector<8x128xf32> to vector<8x128xbf16>
    %c0_11 = arith.constant 0 : index
    %c0_12 = arith.constant 0 : index
    %17 = vector.load %arg1[%c0_11, %c0_12] : memref<128x128xbf16, #tpu.memory_space<vmem>>, vector<128x128xbf16>
    %cst = arith.constant dense<0.000000e+00> : vector<8x128xf32>
    %18 = tpu.matmul %16, %17, %cst {dimension_numbers = #tpu.dot_dimension_numbers<[1], [0], [0], [1], [0, 0, 1, 1], [], []>} : vector<8x128xbf16>, vector<128x128xbf16>, vector<8x128xf32> -> vector<8x128xf32>
    %19 = arith.addf %18, %2 : vector<8x128xf32>
    %cst_13 = arith.constant 5.000000e-01 : f32
    %20 = vector.broadcast %cst_13 : f32 to vector<8x128xf32>
    %21 = arith.mulf %20, %19 : vector<8x128xf32>
    %22 = math.tanh %21 : vector<8x128xf32>
    %cst_14 = arith.constant 5.000000e-01 : f32
    %23 = vector.broadcast %cst_14 : f32 to vector<8x128xf32>
    %24 = arith.mulf %23, %22 : vector<8x128xf32>
    %cst_15 = arith.constant 5.000000e-01 : f32
    %25 = vector.broadcast %cst_15 : f32 to vector<8x128xf32>
    %26 = arith.addf %24, %25 : vector<8x128xf32>
    %27 = arith.truncf %26 : vector<8x128xf32> to vector<8x128xbf16>
    %c0_16 = arith.constant 0 : index
    %c0_17 = arith.constant 0 : index
    %28 = vector.load %arg3[%c0_16, %c0_17] : memref<128x128xbf16, #tpu.memory_space<vmem>>, vector<128x128xbf16>
    %cst_18 = arith.constant dense<0.000000e+00> : vector<8x128xf32>
    %29 = tpu.matmul %27, %28, %cst_18 {dimension_numbers = #tpu.dot_dimension_numbers<[1], [0], [0], [1], [0, 0, 1, 1], [], []>} : vector<8x128xbf16>, vector<128x128xbf16>, vector<8x128xf32> -> vector<8x128xf32>
    %30 = arith.addf %29, %5 : vector<8x128xf32>
    %cst_19 = arith.constant 5.000000e-01 : f32
    %31 = vector.broadcast %cst_19 : f32 to vector<8x128xf32>
    %32 = arith.mulf %31, %30 : vector<8x128xf32>
    %33 = math.tanh %32 : vector<8x128xf32>
    %cst_20 = arith.constant 5.000000e-01 : f32
    %34 = vector.broadcast %cst_20 : f32 to vector<8x128xf32>
    %35 = arith.mulf %34, %33 : vector<8x128xf32>
    %cst_21 = arith.constant 5.000000e-01 : f32
    %36 = vector.broadcast %cst_21 : f32 to vector<8x128xf32>
    %37 = arith.addf %35, %36 : vector<8x128xf32>
    %38 = arith.truncf %37 : vector<8x128xf32> to vector<8x128xbf16>
    %c0_22 = arith.constant 0 : index
    %c0_23 = arith.constant 0 : index
    %39 = vector.load %arg5[%c0_22, %c0_23] : memref<128x128xbf16, #tpu.memory_space<vmem>>, vector<128x128xbf16>
    %cst_24 = arith.constant dense<0.000000e+00> : vector<8x128xf32>
    %40 = tpu.matmul %38, %39, %cst_24 {dimension_numbers = #tpu.dot_dimension_numbers<[1], [0], [0], [1], [0, 0, 1, 1], [], []>} : vector<8x128xbf16>, vector<128x128xbf16>, vector<8x128xf32> -> vector<8x128xf32>
    %41 = arith.addf %40, %8 : vector<8x128xf32>
    %cst_25 = arith.constant 5.000000e-01 : f32
    %42 = vector.broadcast %cst_25 : f32 to vector<8x128xf32>
    %43 = arith.mulf %42, %41 : vector<8x128xf32>
    %44 = math.tanh %43 : vector<8x128xf32>
    %cst_26 = arith.constant 5.000000e-01 : f32
    %45 = vector.broadcast %cst_26 : f32 to vector<8x128xf32>
    %46 = arith.mulf %45, %44 : vector<8x128xf32>
    %cst_27 = arith.constant 5.000000e-01 : f32
    %47 = vector.broadcast %cst_27 : f32 to vector<8x128xf32>
    %48 = arith.addf %46, %47 : vector<8x128xf32>
    %49 = arith.truncf %48 : vector<8x128xf32> to vector<8x128xbf16>
    %c0_28 = arith.constant 0 : index
    %c0_29 = arith.constant 0 : index
    %50 = vector.load %arg7[%c0_28, %c0_29] : memref<128x128xbf16, #tpu.memory_space<vmem>>, vector<128x128xbf16>
    %cst_30 = arith.constant dense<0.000000e+00> : vector<8x128xf32>
    %51 = tpu.matmul %49, %50, %cst_30 {dimension_numbers = #tpu.dot_dimension_numbers<[1], [0], [0], [1], [0, 0, 1, 1], [], []>} : vector<8x128xbf16>, vector<128x128xbf16>, vector<8x128xf32> -> vector<8x128xf32>
    %52 = arith.addf %51, %11 : vector<8x128xf32>
    %cst_31 = arith.constant 5.000000e-01 : f32
    %53 = vector.broadcast %cst_31 : f32 to vector<8x128xf32>
    %54 = arith.mulf %53, %52 : vector<8x128xf32>
    %55 = math.tanh %54 : vector<8x128xf32>
    %cst_32 = arith.constant 5.000000e-01 : f32
    %56 = vector.broadcast %cst_32 : f32 to vector<8x128xf32>
    %57 = arith.mulf %56, %55 : vector<8x128xf32>
    %cst_33 = arith.constant 5.000000e-01 : f32
    %58 = vector.broadcast %cst_33 : f32 to vector<8x128xf32>
    %59 = arith.addf %57, %58 : vector<8x128xf32>
    %60 = arith.truncf %59 : vector<8x128xf32> to vector<8x128xbf16>
    %c0_34 = arith.constant 0 : index
    %c0_35 = arith.constant 0 : index
    %61 = vector.load %arg9[%c0_34, %c0_35] : memref<128x128xbf16, #tpu.memory_space<vmem>>, vector<128x128xbf16>
    %cst_36 = arith.constant dense<0.000000e+00> : vector<8x128xf32>
    %62 = tpu.matmul %60, %61, %cst_36 {dimension_numbers = #tpu.dot_dimension_numbers<[1], [0], [0], [1], [0, 0, 1, 1], [], []>} : vector<8x128xbf16>, vector<128x128xbf16>, vector<8x128xf32> -> vector<8x128xf32>
    %63 = arith.addf %62, %14 : vector<8x128xf32>
    %c0_37 = arith.constant 0 : index
    %c0_38 = arith.constant 0 : index
    %64 = vector.load %arg11[%c0_37, %c0_38] : memref<8x128xf32, #tpu.memory_space<vmem>>, vector<8x128xf32>
    tpu.vector_store %arg11[%c0_37, %c0_38], %63 {strides = array<i32>} : memref<8x128xf32, #tpu.memory_space<vmem>>, vector<8x128xf32>,
    return
  }
}

</mosaic_0001>

<bundles_post_ra>
// kernel: tpu_custom_call.1
= control target key start
LH: loop header
LB: loop body
LE: loop exit
PB: predicated region body
PF: predicated region fallthrough
CT: control target
= control target key end

     0   :  { %16 = vsyncpa [#allocation3], 0  ;;  %s1364_s0 = inlined_call_operand.hbm [shape: f32[8,128], index: 0, kind: input, shape index: {}]   ;;  %s1365_s1 = inlined_call_operand.hbm [shape: bf16[128,128], index: 1, kind: input, shape index: {}]   ;;  %s1366_s2 = inlined_call_operand.vmem [shape: f32[1,128], index: 2, kind: input, shape index: {}]   ;;  %s1367_s3 = inlined_call_operand.hbm [shape: bf16[128,128], index: 3, kind: input, shape index: {}]   ;;  %s1368_s4 = inlined_call_operand.vmem [shape: f32[1,128], index: 4, kind: input, shape index: {}]   ;;  %s1369_s5 = inlined_call_operand.hbm [shape: bf16[128,128], index: 5, kind: input, shape index: {}]   ;;  %s1370_s6 = inlined_call_operand.vmem [shape: f32[1,128], index: 6, kind: input, shape index: {}]   ;;  %s1371_s7 = inlined_call_operand.hbm [shape: bf16[128,128], index: 7, kind: input, shape index: {}]   ;;  %s1372_s8 = inlined_call_operand.vmem [shape: f32[1,128], index: 8, kind: input, shape index: {}]   ;;  %s1373_s9 = inlined_call_operand.hbm [shape: bf16[128,128], index: 9, kind: input, shape index: {}]   ;;  %s1374_s10 = inlined_call_operand.vmem [shape: f32[1,128], index: 10, kind: input, shape index: {}]   ;;  %s1375_s11 = inlined_call_operand.hbm [shape: f32[8,128], index: 11, kind: output, shape index: {}]  }
   0x1   :  { %17 = vsyncpa [#allocation6], 0 }
   0x2   :  { %18 = vsyncpa [#allocation9], 0 }
   0x3   :  { %19 = vsyncpa [#allocation12], 0 }
   0x4   :  { %20 = vsyncpa [#allocation4], 0  ;;  %s1129_s17 = smov [#allocation5]   ;;  %s965_s21 = scalar_lea.hbm %s1365_s1, 1024 }
   0x5   :  { %s36_s18 = sshll.u32 %s1129_s17, 4  ;;  %p966_p0 = scmp.ne.s32.totalorder %s1365_s1, %s965_s21  ;;  %s37_s18 = int_to_ptr.vmem [resolvable:$true] %s36_s18 }
   0x6   :  { %p969_p1 = scmp.lt.u32.totalorder %s965_s21, %s1365_s1 }
   0x8   :  { %p971_p2 = pnand %p969_p1, %p966_p0 }
   0xa   :  { %974 = shalt.err (!%p971_p2)
}
   0xb   :  { %s975_s26 = scalar_lea.vmem %s37_s18, 1024  ;;  %p980_p4 = scmp.lt.s32.totalorder %s37_s18, %s37_s18 }
   0xc   :  { %p976_p3 = scmp.ne.s32.totalorder %s37_s18, %s975_s26  ;;  %p981_p5 = scmp.lt.s32.totalorder %s975_s26, %s975_s26 }
   0xe   :  { %p982_p6 = por %p981_p5, %p980_p4 }
  0x10   :  { %p983_p7 = pnand %p982_p6, %p976_p3 }
  0x12   :  { %986 = shalt.err (!%p983_p7)
}
  0x13   :  { %s1130_s27 = smov 64   ;;  %s1131_s28 = smov 4  }
  0x14   :  { %42 = dma.hbm_to_vmem [thread:$0]  %s1365_s1, 1024, %s37_s18, [#allocation6], %s1130_s27, %s1130_s27, %s1131_s28  }
  0x15   :  { %s1132_s12 = smov [#allocation8]   ;;  %s1133_s14 = smov [#allocation2]  }
  0x16   :  { %s64_s13 = sshll.u32 %s1132_s12, 4  ;;  %s27_s15 = sshll.u32 %s1133_s14, 4  ;;  %s65_s13 = int_to_ptr.vmem [resolvable:$true] %s64_s13  ;;  %s28_s15 = int_to_ptr.vmem [resolvable:$true] %s27_s15 }
  0x17   :  { %s987_s19 = scalar_lea.hbm %s1369_s5, 1024 }
  0x18   :  { %p988_p8 = scmp.ne.s32.totalorder %s1369_s5, %s987_s19  ;;  %p991_p9 = scmp.lt.u32.totalorder %s987_s19, %s1369_s5 }
  0x1a   :  { %p993_p10 = pnand %p991_p9, %p988_p8 }
  0x1c   :  { %996 = shalt.err (!%p993_p10)
}
  0x1d   :  { %s997_s1 = scalar_lea.vmem %s65_s13, 1024  ;;  %p1002_p12 = scmp.lt.s32.totalorder %s65_s13, %s65_s13 }
  0x1e   :  { %p998_p11 = scmp.ne.s32.totalorder %s65_s13, %s997_s1  ;;  %p1003_p13 = scmp.lt.s32.totalorder %s997_s1, %s997_s1 }
  0x20   :  { %p1004_p0 = por %p1003_p13, %p1002_p12 }
  0x22   :  { %p1005_p1 = pnand %p1004_p0, %p998_p11 }
  0x24   :  { %1008 = shalt.err (!%p1005_p1)
}
  0x25   :  { %70 = dma.hbm_to_vmem [thread:$0]  %s1369_s5, 1024, %s65_s13, [#allocation9], %s1130_s27, %s1130_s27, %s1131_s28  }
  0x26   :  { %s1009_s29 = scalar_lea.hbm %s1364_s0, 128 }
  0x27   :  { %p1010_p2 = scmp.ne.s32.totalorder %s1364_s0, %s1009_s29  ;;  %p1013_p3 = scmp.lt.u32.totalorder %s1009_s29, %s1364_s0 }
  0x29   :  { %p1015_p4 = pnand %p1013_p3, %p1010_p2 }
  0x2b   :  { %1018 = shalt.err (!%p1015_p4)
}
  0x2c   :  { %s1019_s17 = scalar_lea.vmem %s28_s15, 128  ;;  %p1024_p6 = scmp.lt.s32.totalorder %s28_s15, %s28_s15 }
  0x2d   :  { %p1020_p5 = scmp.ne.s32.totalorder %s28_s15, %s1019_s17  ;;  %p1025_p7 = scmp.lt.s32.totalorder %s1019_s17, %s1019_s17 }
  0x2f   :  { %p1026_p8 = por %p1025_p7, %p1024_p6 }
  0x31   :  { %p1027_p9 = pnand %p1026_p8, %p1020_p5 }
  0x33   :  { %1030 = shalt.err (!%p1027_p9)
}
  0x34   :  { %30 = dma.hbm_to_vmem [thread:$0]  %s1364_s0, 128, %s28_s15, [#allocation3]  }
  0x35   :  { %s1134_s19 = smov [#allocation7]   ;;  %s1135_s21 = smov [#allocation10]  }
  0x36   :  { %s50_s20 = sshll.u32 %s1134_s19, 4  ;;  %s78_s22 = sshll.u32 %s1135_s21, 4  ;;  %s51_s20 = int_to_ptr.vmem [resolvable:$true] %s50_s20  ;;  %s79_s22 = int_to_ptr.vmem [resolvable:$true] %s78_s22 }
  0x37   :  { %s1031_s18 = scalar_lea.hbm %s1367_s3, 1024 }
  0x38   :  { %p1032_p10 = scmp.ne.s32.totalorder %s1367_s3, %s1031_s18  ;;  %p1035_p11 = scmp.lt.u32.totalorder %s1031_s18, %s1367_s3 }
  0x3a   :  { %p1037_p12 = pnand %p1035_p11, %p1032_p10 }
  0x3c   :  { %1040 = shalt.err (!%p1037_p12)
}
  0x3d   :  { %s1041_s0 = scalar_lea.vmem %s51_s20, 1024  ;;  %p1046_p0 = scmp.lt.s32.totalorder %s51_s20, %s51_s20 }
  0x3e   :  { %p1042_p13 = scmp.ne.s32.totalorder %s51_s20, %s1041_s0  ;;  %p1047_p1 = scmp.lt.s32.totalorder %s1041_s0, %s1041_s0 }
  0x40   :  { %p1048_p2 = por %p1047_p1, %p1046_p0 }
  0x42   :  { %p1049_p3 = pnand %p1048_p2, %p1042_p13 }
  0x44   :  { %1052 = shalt.err (!%p1049_p3)
}
  0x45   :  { %56 = dma.hbm_to_vmem [thread:$0]  %s1367_s3, 1024, %s51_s20, [#allocation6], %s1130_s27, %s1130_s27, %s1131_s28  }
  0x46   :  { %s1053_s16 = scalar_lea.hbm %s1371_s7, 1024 }
  0x47   :  { %p1054_p4 = scmp.ne.s32.totalorder %s1371_s7, %s1053_s16  ;;  %p1057_p5 = scmp.lt.u32.totalorder %s1053_s16, %s1371_s7 }
  0x49   :  { %p1059_p6 = pnand %p1057_p5, %p1054_p4 }
  0x4b   :  { %1062 = shalt.err (!%p1059_p6)
}
  0x4c   :  { %s1063_s21 = scalar_lea.vmem %s79_s22, 1024  ;;  %p1068_p8 = scmp.lt.s32.totalorder %s79_s22, %s79_s22 }
  0x4d   :  { %p1064_p7 = scmp.ne.s32.totalorder %s79_s22, %s1063_s21  ;;  %p1069_p9 = scmp.lt.s32.totalorder %s1063_s21, %s1063_s21 }
  0x4f   :  { %p1070_p10 = por %p1069_p9, %p1068_p8 }
  0x51   :  { %p1071_p11 = pnand %p1070_p10, %p1064_p7 }
  0x53   :  { %1074 = shalt.err (!%p1071_p11)
}
  0x54   :  { %84 = dma.hbm_to_vmem [thread:$0]  %s1371_s7, 1024, %s79_s22, [#allocation9], %s1130_s27, %s1130_s27, %s1131_s28  }
  0x55   :  { %s1136_s23 = smov [#allocation11]   ;;  %s1075_s25 = scalar_lea.hbm %s1373_s9, 1024 }
  0x56   :  { %s92_s1 = sshll.u32 %s1136_s23, 4  ;;  %p1076_p12 = scmp.ne.s32.totalorder %s1373_s9, %s1075_s25  ;;  %s93_s1 = int_to_ptr.vmem [resolvable:$true] %s92_s1 }
  0x57   :  { %p1079_p13 = scmp.lt.u32.totalorder %s1075_s25, %s1373_s9 }
  0x59   :  { %p1081_p0 = pnand %p1079_p13, %p1076_p12 }
  0x5b   :  { %1084 = shalt.err (!%p1081_p0)
}
  0x5c   :  { %s1085_s30 = scalar_lea.vmem %s93_s1, 1024  ;;  %p1090_p2 = scmp.lt.s32.totalorder %s93_s1, %s93_s1 }
  0x5d   :  { %p1086_p1 = scmp.ne.s32.totalorder %s93_s1, %s1085_s30  ;;  %p1091_p3 = scmp.lt.s32.totalorder %s1085_s30, %s1085_s30 }
  0x5f   :  { %p1092_p4 = por %p1091_p3, %p1090_p2 }
  0x61   :  { %p1093_p5 = pnand %p1092_p4, %p1086_p1 }
  0x63   :  { %1096 = shalt.err (!%p1093_p5)
}
  0x64   :  { %98 = dma.hbm_to_vmem [thread:$0]  %s1373_s9, 1024, %s93_s1, [#allocation12], %s1130_s27, %s1130_s27, %s1131_s28  }
  0x65   :  { %1119 = dma.done.wait [#allocation3], 128  }
  0x66   :  { %1120 = vsyncadd [#allocation3], 4294967168 }
  0x67   :  { %1121 = dma.done.wait [#allocation6], 2048  }
  0x68   :  { %1122 = vsyncadd [#allocation6], 4294965248 }
  0x69   :  { %1123 = dma.done.wait [#allocation9], 2048  }
  0x6a   :  { %1124 = vsyncadd [#allocation9], 4294965248 }
  0x6b   :  { %1125 = dma.done.wait [#allocation12], 1024  }
  0x6c   :  { %1126 = vsyncadd [#allocation12], 4294966272  ;;  %v1137_v0 = vmov 0.0   ;;  %vm1138_vm0 = vmmov 0   ;;  %v917_v1 = vld [vmem:[#allocation5] sm:$0xff]   ;;  %v918_v2 = vld [vmem:[#allocation5 + $0x8] sm:$0xff]  }
  0x6d   :  { %806 = vmatprep.subr.bf16.mxu0 %v1137_v0  ;;  %822 = vmatprep.mubr.msk.bf16.mxu0 %vm1138_vm0, %v1137_v0  ;;  %v919_v3 = vld [vmem:[#allocation5 + $0x10] sm:$0xff]   ;;  %v925_v4 = vld [vmem:[#allocation7] sm:$0xff]   ;;  %v920_v5 = vld [vmem:[#allocation5 + $0x18] sm:$0xff]   ;;  %s1139_s5 = smov [#allocation13]  }
  0x6e   :  { %826 = vmatprep.subr.bf16.mxu1 %v1137_v0  ;;  %842 = vmatprep.mubr.msk.bf16.mxu1 %vm1138_vm0, %v1137_v0  ;;  %v926_v6 = vld [vmem:[#allocation7 + $0x8] sm:$0xff]   ;;  %v921_v7 = vld [vmem:[#allocation5 + $0x20] sm:$0xff]   ;;  %v927_v8 = vld [vmem:[#allocation7 + $0x10] sm:$0xff]   ;;  %s704_s13 = sshll.u32 %s1139_s5, 4  ;;  %s705_s13 = int_to_ptr.vmem [resolvable:$true] %s704_s13 }
  0x6f   :  { %807 = vmatpush3.bf16.msra.mxu0 %v917_v1  ;;  %827 = vmatpush3.bf16.msra.mxu1 %v925_v4  ;;  %v922_v9 = vld [vmem:[#allocation5 + $0x28] sm:$0xff]   ;;  %v923_v10 = vld [vmem:[#allocation5 + $0x30] sm:$0xff]   ;;  %v924_v11 = vld [vmem:[#allocation5 + $0x38] sm:$0xff]   ;;  %p1102_p7 = scmp.lt.s32.totalorder %s705_s13, %s705_s13 }
  0x70   :  { %808 = vmatprep.subr.bf16.mxu0 %v1137_v0  ;;  %828 = vmatprep.subr.bf16.mxu1 %v1137_v0  ;;  %v155_v12 = vld [vmem:[#allocation2] sm:$0xff]  ;;  %v929_v15 = vld [vmem:[#allocation7 + $0x20] sm:$0xff]   ;;  %v930_v16 = vld [vmem:[#allocation7 + $0x28] sm:$0xff]  }
  0x71   :  { %v156_v13 = vpack.c.bf16 %v155_v12, %v155_v12  ;;  %v928_v14 = vld [vmem:[#allocation7 + $0x18] sm:$0xff]   ;;  %v931_v17 = vld [vmem:[#allocation7 + $0x30] sm:$0xff]   ;;  %v933_v19 = vld [vmem:[#allocation8] sm:$0xff]  }
  0x72   :  { %v932_v18 = vld [vmem:[#allocation7 + $0x38] sm:$0xff]   ;;  %v934_v20 = vld [vmem:[#allocation8 + $0x8] sm:$0xff]   ;;  %v935_v21 = vld [vmem:[#allocation8 + $0x10] sm:$0xff]  }
  0x73   :  { %809 = vmatpush3.bf16.msra.mxu0 %v918_v2  ;;  %829 = vmatpush3.bf16.msra.mxu1 %v926_v6  ;;  %v716_v22 = vld [vmem:[%s1366_s2] ss:$0 sm:$0xff]  ;;  %v937_v34 = vld [vmem:[#allocation8 + $0x20] sm:$0xff]   ;;  %v938_v35 = vld [vmem:[#allocation8 + $0x28] sm:$0xff]  }
  0x74   :  { %810 = vmatprep.subr.bf16.mxu0 %v1137_v0  ;;  %830 = vmatprep.subr.bf16.mxu1 %v1137_v0  ;;  %v936_v33 = vld [vmem:[#allocation8 + $0x18] sm:$0xff]   ;;  %v939_v36 = vld [vmem:[#allocation8 + $0x30] sm:$0xff]   ;;  %v941_v38 = vld [vmem:[#allocation10] sm:$0xff]  }
  0x75   :  { %v940_v37 = vld [vmem:[#allocation8 + $0x38] sm:$0xff]   ;;  %v942_v39 = vld [vmem:[#allocation10 + $0x8] sm:$0xff]   ;;  %v943_v40 = vld [vmem:[#allocation10 + $0x10] sm:$0xff]  }
  0x76   :  { %v717_v41 = vld [vmem:[%s1368_s4] ss:$0 sm:$0xff]  ;;  %v945_v53 = vld [vmem:[#allocation10 + $0x20] sm:$0xff]   ;;  %v946_v54 = vld [vmem:[#allocation10 + $0x28] sm:$0xff]  }
  0x77   :  { %811 = vmatpush3.bf16.msra.mxu0 %v919_v3  ;;  %831 = vmatpush3.bf16.msra.mxu1 %v927_v8  ;;  %v944_v52 = vld [vmem:[#allocation10 + $0x18] sm:$0xff]   ;;  %v947_v55 = vld [vmem:[#allocation10 + $0x30] sm:$0xff]   ;;  %v949_v57 = vld [vmem:[#allocation11] sm:$0xff]  }
  0x78   :  { %812 = vmatprep.subr.bf16.mxu0 %v1137_v0  ;;  %832 = vmatprep.subr.bf16.mxu1 %v1137_v0  ;;  %v948_v56 = vld [vmem:[#allocation10 + $0x38] sm:$0xff]   ;;  %v950_v58 = vld [vmem:[#allocation11 + $0x8] sm:$0xff]   ;;  %v951_v59 = vld [vmem:[#allocation11 + $0x10] sm:$0xff]  }
  0x79   :  { %v718_v60 = vld [vmem:[%s1370_s6] ss:$0 sm:$0xff] }
  0x7a   :  { %v952_v8 = vld [vmem:[#allocation11 + $0x18] sm:$0xff]  }
  0x7b   :  { %813 = vmatpush3.bf16.msra.mxu0 %v920_v5  ;;  %833 = vmatpush3.bf16.msra.mxu1 %v928_v14  ;;  %v956_v12 = vld [vmem:[#allocation11 + $0x38] sm:$0xff]  }
  0x7c   :  { %814 = vmatprep.subr.bf16.mxu0 %v1137_v0  ;;  %834 = vmatprep.subr.bf16.mxu1 %v1137_v0 }
  0x7f   :  { %815 = vmatpush3.bf16.msra.mxu0 %v921_v7  ;;  %835 = vmatpush3.bf16.msra.mxu1 %v929_v15 }
  0x80   :  { %816 = vmatprep.subr.bf16.mxu0 %v1137_v0  ;;  %836 = vmatprep.subr.bf16.mxu1 %v1137_v0 }
  0x83   :  { %817 = vmatpush3.bf16.msra.mxu0 %v922_v9  ;;  %837 = vmatpush3.bf16.msra.mxu1 %v930_v16  ;;  %v953_v9 = vld [vmem:[#allocation11 + $0x20] sm:$0xff]  }
  0x84   :  { %818 = vmatprep.subr.bf16.mxu0 %v1137_v0  ;;  %838 = vmatprep.subr.bf16.mxu1 %v1137_v0 }
  0x87   :  { %819 = vmatpush3.bf16.msra.mxu0 %v923_v10  ;;  %839 = vmatpush3.bf16.msra.mxu1 %v931_v17  ;;  %v954_v10 = vld [vmem:[#allocation11 + $0x28] sm:$0xff]  }
  0x88   :  { %820 = vmatprep.subr.bf16.mxu0 %v1137_v0  ;;  %840 = vmatprep.subr.bf16.mxu1 %v1137_v0 }
  0x8b   :  { %821 = vmatpush3.bf16.msra.mxu0 %v924_v11  ;;  %841 = vmatpush3.bf16.msra.mxu1 %v932_v18  ;;  %v955_v11 = vld [vmem:[#allocation11 + $0x30] sm:$0xff]  }
  0x8c   :  { %846 = vmatprep.subr.bf16.mxu0 %v1137_v0  ;;  %866 = vmatprep.subr.bf16.mxu1 %v1137_v0 }
  0x8e   :  { %823 = vmatmul.mubr.bf16.vlgmr.msra.gmra.mrb[0].mxu0 %v156_v13  ;;  %v719_v13 = vld [vmem:[%s1372_s8] ss:$0 sm:$0xff]  ;;  %s1097_s8 = scalar_lea.vmem %s705_s13, 128 }
  0x8f   :  { %862 = vmatprep.mubr.msk.bf16.mxu0 %vm1138_vm0, %v1137_v0  ;;  %847 = vmatpush3.bf16.msra.mxu0 %v933_v19  ;;  %p1098_p6 = scmp.ne.s32.totalorder %s705_s13, %s1097_s8  ;;  %p1103_p8 = scmp.lt.s32.totalorder %s1097_s8, %s1097_s8 }
  0x90   :  { %848 = vmatprep.subr.bf16.mxu0 %v1137_v0 }
  0x91   :  { %p1104_p9 = por %p1103_p8, %p1102_p7 }
  0x93   :  { %849 = vmatpush3.bf16.msra.mxu0 %v934_v20  ;;  %p1105_p10 = pnand %p1104_p9, %p1098_p6 }
  0x94   :  { %850 = vmatprep.subr.bf16.mxu0 %v1137_v0 }
  0x97   :  { %851 = vmatpush3.bf16.msra.mxu0 %v935_v21 }
  0x98   :  { %852 = vmatprep.subr.bf16.mxu0 %v1137_v0 }
  0x9b   :  { %853 = vmatpush3.bf16.msra.mxu0 %v936_v33 }
  0x9c   :  { %854 = vmatprep.subr.bf16.mxu0 %v1137_v0 }
  0x9f   :  { %855 = vmatpush3.bf16.msra.mxu0 %v937_v34 }
  0xa0   :  { %856 = vmatprep.subr.bf16.mxu0 %v1137_v0 }
  0xa3   :  { %857 = vmatpush3.bf16.msra.mxu0 %v938_v35 }
  0xa4   :  { %858 = vmatprep.subr.bf16.mxu0 %v1137_v0 }
  0xa7   :  { %859 = vmatpush3.bf16.msra.mxu0 %v939_v36 }
  0xa8   :  { %860 = vmatprep.subr.bf16.mxu0 %v1137_v0 }
  0xab   :  { %861 = vmatpush3.bf16.msra.mxu0 %v940_v37 }
  0xac   :  { %886 = vmatprep.subr.bf16.mxu0 %v1137_v0 }
 0x161   :  { %v255_v23 = vpop.f32.mrb[0].mxu0 }
 0x162   :  { %v256_v24 = vadd.f32 %v716_v22, %v255_v23  ;;  %v824_v25 = vpop.f32.mrb[1].mxu0 }
 0x163   :  { %v258_v26 = vpop.f32.mrb[2].mxu0 }
 0x164   :  { %v261_v27 = vmul.f32 0.5, %v256_v24  ;;  %v825_v28 = vpop.f32.mrb[3].mxu0 }
 0x166   :  { %957 = vtanh.f32 %v261_v27 }
 0x170   :  { %v958_v29 = vpop.eup %957 }
 0x171   :  { %v263_v30 = vmul.f32 0.5, %v958_v29 }
 0x173   :  { %v264_v31 = vadd.f32 0.5, %v263_v30 }
 0x175   :  { %v265_v32 = vpack.c.bf16 %v264_v31, %v264_v31 }
 0x177   :  { %843 = vmatmul.mubr.bf16.vlgmr.msra.gmra.mrb[0].mxu1 %v265_v32 }
 0x178   :  { %882 = vmatprep.mubr.msk.bf16.mxu1 %vm1138_vm0, %v1137_v0  ;;  %867 = vmatpush3.bf16.msra.mxu1 %v941_v38 }
 0x179   :  { %868 = vmatprep.subr.bf16.mxu1 %v1137_v0 }
 0x17c   :  { %869 = vmatpush3.bf16.msra.mxu1 %v942_v39 }
 0x17d   :  { %870 = vmatprep.subr.bf16.mxu1 %v1137_v0 }
 0x180   :  { %871 = vmatpush3.bf16.msra.mxu1 %v943_v40 }
 0x181   :  { %872 = vmatprep.subr.bf16.mxu1 %v1137_v0 }
 0x184   :  { %873 = vmatpush3.bf16.msra.mxu1 %v944_v52 }
 0x185   :  { %874 = vmatprep.subr.bf16.mxu1 %v1137_v0 }
 0x188   :  { %875 = vmatpush3.bf16.msra.mxu1 %v945_v53 }
 0x189   :  { %876 = vmatprep.subr.bf16.mxu1 %v1137_v0 }
 0x18c   :  { %877 = vmatpush3.bf16.msra.mxu1 %v946_v54 }
 0x18d   :  { %878 = vmatprep.subr.bf16.mxu1 %v1137_v0 }
 0x190   :  { %879 = vmatpush3.bf16.msra.mxu1 %v947_v55 }
 0x191   :  { %880 = vmatprep.subr.bf16.mxu1 %v1137_v0 }
 0x194   :  { %881 = vmatpush3.bf16.msra.mxu1 %v948_v56 }
 0x24a   :  { %v364_v42 = vpop.f32.mrb[0].mxu1 }
 0x24b   :  { %v365_v43 = vadd.f32 %v717_v41, %v364_v42  ;;  %v844_v44 = vpop.f32.mrb[1].mxu1 }
 0x24c   :  { %v367_v45 = vpop.f32.mrb[2].mxu1 }
 0x24d   :  { %v370_v46 = vmul.f32 0.5, %v365_v43  ;;  %v845_v47 = vpop.f32.mrb[3].mxu1 }
 0x24f   :  { %959 = vtanh.f32 %v370_v46 }
 0x259   :  { %v960_v48 = vpop.eup %959 }
 0x25a   :  { %v372_v49 = vmul.f32 0.5, %v960_v48 }
 0x25c   :  { %v373_v50 = vadd.f32 0.5, %v372_v49 }
 0x25e   :  { %v374_v51 = vpack.c.bf16 %v373_v50, %v373_v50 }
 0x260   :  { %863 = vmatmul.mubr.bf16.vlgmr.msra.gmra.mrb[4].mxu0 %v374_v51 }
 0x261   :  { %902 = vmatprep.mubr.msk.bf16.mxu0 %vm1138_vm0, %v1137_v0  ;;  %887 = vmatpush3.bf16.msra.mxu0 %v949_v57 }
 0x262   :  { %888 = vmatprep.subr.bf16.mxu0 %v1137_v0 }
 0x265   :  { %889 = vmatpush3.bf16.msra.mxu0 %v950_v58 }
 0x266   :  { %890 = vmatprep.subr.bf16.mxu0 %v1137_v0 }
 0x269   :  { %891 = vmatpush3.bf16.msra.mxu0 %v951_v59 }
 0x26a   :  { %892 = vmatprep.subr.bf16.mxu0 %v1137_v0 }
 0x26d   :  { %893 = vmatpush3.bf16.msra.mxu0 %v952_v8 }
 0x26e   :  { %894 = vmatprep.subr.bf16.mxu0 %v1137_v0 }
 0x271   :  { %895 = vmatpush3.bf16.msra.mxu0 %v953_v9 }
 0x272   :  { %896 = vmatprep.subr.bf16.mxu0 %v1137_v0 }
 0x275   :  { %897 = vmatpush3.bf16.msra.mxu0 %v954_v10 }
 0x276   :  { %898 = vmatprep.subr.bf16.mxu0 %v1137_v0 }
 0x279   :  { %899 = vmatpush3.bf16.msra.mxu0 %v955_v11 }
 0x27a   :  { %900 = vmatprep.subr.bf16.mxu0 %v1137_v0  ;;  %v720_v0 = vld [vmem:[%s1374_s10] ss:$0 sm:$0xff] }
 0x27d   :  { %901 = vmatpush3.bf16.msra.mxu0 %v956_v12 }
 0x333   :  { %v473_v61 = vpop.f32.mrb[4].mxu0 }
 0x334   :  { %v474_v62 = vadd.f32 %v718_v60, %v473_v61  ;;  %v864_v63 = vpop.f32.mrb[5].mxu0 }
 0x335   :  { %v476_v1 = vpop.f32.mrb[6].mxu0 }
 0x336   :  { %v479_v2 = vmul.f32 0.5, %v474_v62  ;;  %v865_v3 = vpop.f32.mrb[7].mxu0 }
 0x338   :  { %961 = vtanh.f32 %v479_v2 }
 0x342   :  { %v962_v4 = vpop.eup %961 }
 0x343   :  { %v481_v5 = vmul.f32 0.5, %v962_v4 }
 0x345   :  { %v482_v6 = vadd.f32 0.5, %v481_v5 }
 0x347   :  { %v483_v7 = vpack.c.bf16 %v482_v6, %v482_v6 }
 0x349   :  { %883 = vmatmul.mubr.bf16.vlgmr.msra.gmra.mrb[4].mxu1 %v483_v7 }
 0x41c   :  { %v582_v14 = vpop.f32.mrb[4].mxu1 }
 0x41d   :  { %v583_v15 = vadd.f32 %v719_v13, %v582_v14  ;;  %v884_v16 = vpop.f32.mrb[5].mxu1 }
 0x41e   :  { %v585_v17 = vpop.f32.mrb[6].mxu1 }
 0x41f   :  { %v588_v18 = vmul.f32 0.5, %v583_v15  ;;  %v885_v19 = vpop.f32.mrb[7].mxu1 }
 0x421   :  { %963 = vtanh.f32 %v588_v18 }
 0x42b   :  { %v964_v20 = vpop.eup %963 }
 0x42c   :  { %v590_v21 = vmul.f32 0.5, %v964_v20 }
 0x42e   :  { %v591_v22 = vadd.f32 0.5, %v590_v21 }
 0x430   :  { %v592_v23 = vpack.c.bf16 %v591_v22, %v591_v22 }
 0x432   :  { %903 = vmatmul.mubr.bf16.vlgmr.msra.gmra.mrb[8].mxu0 %v592_v23 }
 0x505   :  { %v691_v24 = vpop.f32.mrb[8].mxu0 }
 0x506   :  { %v692_v25 = vadd.f32 %v720_v0, %v691_v24  ;;  %v904_v26 = vpop.f32.mrb[9].mxu0 }
 0x507   :  { %v694_v27 = vpop.f32.mrb[10].mxu0 }
 0x508   :  { %697 = vst [vmem:[#allocation13] sm:$0xff] %v692_v25  ;;  %v905_v28 = vpop.f32.mrb[11].mxu0 }
 0x509   :  { %1108 = shalt.err (!%p1105_p10)
}
 0x50a   :  { %s1109_s10 = scalar_lea.hbm %s1375_s11, 128 }
 0x50b   :  { %p1110_p11 = scmp.ne.s32.totalorder %s1375_s11, %s1109_s10  ;;  %p1113_p12 = scmp.lt.u32.totalorder %s1109_s10, %s1375_s11 }
 0x50d   :  { %p1115_p13 = pnand %p1113_p12, %p1110_p11 }
 0x50f   :  { %1118 = shalt.err (!%p1115_p13)
}
 0x510   :  { %707 = dma.vmem_to_hbm [thread:$0]  %s705_s13, 128, %s1375_s11, [#allocation4]  }
 0x511   :  { %1127 = dma.done.wait [#allocation4], 128  }
 0x512   :  { %1128 = vsyncadd [#allocation4], 4294967168 }
 0x513   :  { %711 = vsyncpa [#allocation3], 1 }
 0x514   :  { %712 = vsyncpa [#allocation6], 1 }
 0x515   :  { %713 = vsyncpa [#allocation9], 1 }
 0x516   :  { %714 = vsyncpa [#allocation12], 1 }
 0x517   :  { %715 = vsyncpa [#allocation4], 1 }

</bundles_post_ra>
